<compile_context>
chip_gen: v6e
topology: v6e:2x2x1
jax: 0.10.0
libtpu: 0.0.40
codegen_flags: <defaults>
</compile_context>

<pallas_src>
import functools

import jax
import jax.numpy as jnp
from jax import lax
from jax.experimental import pallas as pl
from jax.experimental.pallas import tpu as pltpu

_GOLDEN = 0x9E3779B9          # 2^32 / golden ratio (odd) — fallback hash only


def _lowbias32(x):
    """Chris Wellons' lowbias32 hash, uint32 -> uint32 (interpret fallback)."""
    x = x ^ (x >> 16)
    x = x * jnp.uint32(0x7FEB352D)
    x = x ^ (x >> 15)
    x = x * jnp.uint32(0x846CA68B)
    x = x ^ (x >> 16)
    return x


def _window_max_1d(x, axis, spread_size):
    """Max over window [-s, +s] along `axis` via circular XLU rolls.

    Correct for MaxPool2d(2s+1, stride=1, padding=s) on the true raster because
    the wrapper guarantees a >= s wide all-zero halo and all values are >= 0.
    """
    n = x.shape[axis]
    m = x
    # TODO(synk): for spread_size >= 3 a doubling-shift running max would need
    #             only O(log s) rolls; irrelevant at the default spread_size=1.
    for d in range(1, spread_size + 1):
        fwd = pltpu.roll(x, n - d, axis)   # == roll by -d (reads x[j + d])
        bwd = pltpu.roll(x, d, axis)       # reads x[j - d]
        m = jnp.maximum(m, jnp.maximum(fwd, bwd))
    return m


def _propagate_kernel(rng_ref, x0_ref, goodness_ref, out_ref, *,
                      num_spreads, spread_size, min_transmission,
                      update_threshold, coin_toss_probability, use_hw_prng):
    shape = out_ref.shape                 # (Hp, Wp) — padded, lane/sublane dense
    b = pl.program_id(0)

    # ---------------- hoisted loop invariants ------------------------------
    good = goodness_ref[...]                                        # (Hp, Wp)
    c_tr_a = jnp.float32(1.0 - min_transmission)                    # 1 - mt
    c_tr_b = jnp.float32(min_transmission / 65536.0)                # mt / 2^16
    coin_thresh = jnp.int32(int(round(coin_toss_probability * 65536.0)))
    thr = jnp.float32(update_threshold)

    # Resident state lives in out_ref (aliased with the x0 input in HBM).
    out_ref[...] = x0_ref[...]

    if use_hw_prng:
        # Per-(call, batch-row) decorrelated hardware PRNG stream.
        pltpu.prng_seed(rng_ref[0] + (b + jnp.int32(1)) * jnp.int32(7919))
    else:
        # Stateless counter-hash fallback (non-Mosaic lowering paths).
        row = lax.broadcasted_iota(jnp.int32, shape, 0)
        col = lax.broadcasted_iota(jnp.int32, shape, 1)
        seed_word = (rng_ref[0].astype(jnp.uint32)
                     + (b.astype(jnp.uint32) + jnp.uint32(1))
                     * jnp.uint32(0x85EBCA6B))
        base = (row * shape[1] + col).astype(jnp.uint32) + seed_word

    def cond(carry):
        i, empty = carry
        return jnp.logical_and(i < jnp.int32(num_spreads), empty <= jnp.int32(4))

    def body(carry):
        i, empty = carry
        x = out_ref[...]

        # One 32-bit random word per element per spread.
        if use_hw_prng:
            bits = pltpu.prng_random_bits(shape).astype(jnp.uint32)
        else:
            bits = _lowbias32(base + i.astype(jnp.uint32) * jnp.uint32(_GOLDEN))
        hi = (bits >> 16).astype(jnp.int32)                 # transmission u16
        lo = (bits & jnp.uint32(0xFFFF)).astype(jnp.int32)  # coin toss u16

        # random transmission factor in [1 - mt, 1)
        y = x * (c_tr_a + hi.astype(jnp.float32) * c_tr_b)

        # MaxPool2d(2s+1, stride=1, padding=s) as a separable window max
        # (XLU rolls; zero halo stands in for the -inf padding).
        y = _window_max_1d(y, 1, spread_size)               # lanes (W)
        y = _window_max_1d(y, 0, spread_size)               # sublanes (H)

        # coin toss (keep with prob 1 - p), then terrain goodness
        y = jnp.where(lo >= coin_thresh, y, jnp.float32(0.0)) * good

        delta = y - x
        if update_threshold > 0.0:
            # Exact fusion of `y*(delta>thr)` with `max(., x)` when thr > 0.
            out_ref[...] = jnp.where(delta > thr, y, x)
        else:
            out_ref[...] = jnp.maximum(jnp.where(delta > thr, y,
                                                 jnp.float32(0.0)), x)

        # Early-stop bookkeeping — faithful to torch: sum of the pre-threshold
        # delta; it is exactly 0 only when this raster is entirely dead.
        s = jnp.sum(delta)
        empty = jnp.where(s == jnp.float32(0.0), empty + jnp.int32(1),
                          jnp.int32(0))
        return i + jnp.int32(1), empty

    lax.while_loop(cond, body, (jnp.int32(0), jnp.int32(0)))


def random_propagate(seed, habitat, goodness, *, num_spreads=100, spread_size=1,
                     min_transmission=1e-4, update_threshold=0.05,
                     coin_toss_probability=0.5, rng_seed=0):
    squeeze = seed.ndim < 3
    if squeeze:
        seed = seed[None]
    seed = jnp.asarray(seed, jnp.float32)
    habitat = jnp.asarray(habitat, jnp.float32)
    goodness = jnp.asarray(goodness, jnp.float32)
    B, H, W = seed.shape
    assert habitat.shape == (H, W) and goodness.shape == (H, W)
    s = int(spread_size)

    # habitat is only needed at init: fold it into x0 in the wrapper.
    x0 = seed * habitat[None] * goodness[None]

    # Lane/sublane-dense padding with a guaranteed zero halo of >= spread_size
    # cells past the true raster on both axes (pad goodness = 0 keeps it inert;
    # all populations are >= 0 so max-with-zero == MaxPool2d's -inf padding).
    Hp = max(8, -(-(H + s) // 8) * 8)
    Wp = max(128, -(-(W + s) // 128) * 128)
    if (Hp, Wp) != (H, W):
        x0 = jnp.pad(x0, ((0, 0), (0, Hp - H), (0, Wp - W)))
        goodness_p = jnp.pad(goodness, ((0, Hp - H), (0, Wp - W)))
    else:
        goodness_p = goodness

    use_hw_prng = jax.default_backend() == "tpu"
    kernel = functools.partial(
        _propagate_kernel,
        num_spreads=int(num_spreads), spread_size=s,
        min_transmission=float(min_transmission),
        update_threshold=float(update_threshold),
        coin_toss_probability=float(coin_toss_probability),
        use_hw_prng=use_hw_prng)

    # VMEM budget: 2x-buffered x0/goodness/out blocks (~6) plus the handful of
    # full-size temporaries alive inside one spread -> ~14 blocks, capped below
    # physical VMEM (≈54 MiB on v7x's 64 MiB, ≈109 MiB on v5e/v6e's 128 MiB).
    block_bytes = Hp * Wp * 4
    try:
        vmem_cap = int(getattr(pltpu.get_tpu_info(), "vmem_capacity_bytes",
                               128 * 2**20))
    except Exception:                                   # non-TPU / old runtime
        vmem_cap = 128 * 2**20
    vmem_limit = int(min(int(0.85 * vmem_cap),
                         max(32 * 2**20, 14 * block_bytes)))

    out = pl.pallas_call(
        kernel,
        out_shape=jax.ShapeDtypeStruct((B, Hp, Wp), jnp.float32),
        grid=(B,),
        in_specs=[
            pl.BlockSpec(memory_space=pltpu.MemorySpace.SMEM),        # rng seed
            pl.BlockSpec((None, Hp, Wp), lambda b: (b, 0, 0)),        # x0
            pl.BlockSpec((Hp, Wp), lambda b: (0, 0)),                 # goodness
        ],
        out_specs=pl.BlockSpec((None, Hp, Wp), lambda b: (b, 0, 0)),
        input_output_aliases={1: 0},       # x0 (input 1) aliases the output
        compiler_params=pltpu.CompilerParams(
            dimension_semantics=("parallel",),   # batch rows across TCs
            vmem_limit_bytes=vmem_limit),
        # NOTE: pipeline_mode=pl.Buffered(1) on the constant-index goodness
        # block would save one more (Hp,Wp) VMEM buffer; omitted for API
        # portability across jax versions.
    )(jnp.asarray([rng_seed], dtype=jnp.int32), x0, goodness_p)

    out = out[:, :H, :W]
    return out[0] if squeeze else out


class RandomPropagate:
    """JAX/Pallas port of the PyTorch RandomPropagate module (forward only)."""

    def __init__(self, habitat, terrain, num_spreads=100, spread_size=1,
                 update_threshold=0.05, coin_toss_probability=0.5):
        assert isinstance(spread_size, int) and isinstance(num_spreads, int)
        self.habitat = habitat
        self.goodness = terrain            # the "parameter"
        self.num_spreads = num_spreads
        self.spread_size = spread_size
        self.min_transmission = 0.0001
        self.update_threshold = update_threshold
        self.coin_toss_probability = coin_toss_probability

    def __call__(self, seed, rng_seed=0):
        return random_propagate(
            seed, self.habitat, self.goodness,
            num_spreads=self.num_spreads, spread_size=self.spread_size,
            min_transmission=self.min_transmission,
            update_threshold=self.update_threshold,
            coin_toss_probability=self.coin_toss_probability,
            rng_seed=rng_seed)


if __name__ == "__main__":
    B, H, W = 2, 16, 16
    key = jax.random.PRNGKey(0)
    k_hab, k_ter, k_seed = jax.random.split(key, 3)

    habitat = jax.random.uniform(k_hab, (H, W), dtype=jnp.float32)    # 2-D habitat
    terrain = jax.random.uniform(k_ter, (H, W), dtype=jnp.float32)    # goodness
    seed_pts = (jax.random.uniform(k_seed, (B, H, W)) < 0.15).astype(jnp.float32)

    model = RandomPropagate(habitat, terrain, num_spreads=12, spread_size=1)
    out = jax.block_until_ready(model(seed_pts, rng_seed=0))

    assert out.shape == (B, H, W) and out.dtype == jnp.float32
    assert bool(jnp.all(jnp.isfinite(out)))
    # Output must dominate the initial seeded population (monotone updates).
    x0 = seed_pts * habitat[None] * terrain[None]
    assert bool(jnp.all(out >= x0 - 1e-6))

    print("KERNEL_OK")
</pallas_src>

<mosaic_0001>
module attributes {stable_mosaic.version = 11 : i64} {
  func.func @_propagate_kernel(%arg0: i32, %arg1: memref<1xi32, #tpu.memory_space<smem>>, %arg2: memref<1x24x128xf32, #tpu.memory_space<vmem>>, %arg3: memref<24x128xf32, #tpu.memory_space<vmem>>, %arg4: memref<1x24x128xf32, #tpu.memory_space<vmem>>) attributes {dimension_semantics = [#tpu.dimension_semantics<parallel>], iteration_bounds = array<i64: 2>, scalar_prefetch = 0 : i64, scratch_operands = 0 : i64, tpu.core_type = #tpu.core_type<tc>, window_params = [{transform_indices = @transform_0, window_bounds = array<i64: 1>}, {transform_indices = @transform_1, window_bounds = array<i64: 1, 24, 128>}, {pipeline_mode = #tpu.pipeline_mode<synchronous>, transform_indices = @transform_2, window_bounds = array<i64: 24, 128>}, {transform_indices = @transform_3, window_bounds = array<i64: 1, 24, 128>}]} {
    %c0 = arith.constant 0 : index
    %c0_0 = arith.constant 0 : index
    %0 = vector.load %arg3[%c0, %c0_0] : memref<24x128xf32, #tpu.memory_space<vmem>>, vector<24x128xf32>
    %c0_1 = arith.constant 0 : index
    %c0_2 = arith.constant 0 : index
    %c0_3 = arith.constant 0 : index
    %1 = vector.load %arg2[%c0_1, %c0_2, %c0_3] : memref<1x24x128xf32, #tpu.memory_space<vmem>>, vector<1x24x128xf32>
    %2 = vector.shape_cast %1 : vector<1x24x128xf32> to vector<24x128xf32>
    %c0_4 = arith.constant 0 : index
    %c0_5 = arith.constant 0 : index
    %c0_6 = arith.constant 0 : index
    %3 = vector.load %arg4[%c0_4, %c0_5, %c0_6] : memref<1x24x128xf32, #tpu.memory_space<vmem>>, vector<1x24x128xf32>
    %4 = vector.shape_cast %3 : vector<1x24x128xf32> to vector<24x128xf32>
    %5 = vector.shape_cast %2 : vector<24x128xf32> to vector<1x24x128xf32>
    tpu.vector_store %arg4[%c0_4, %c0_5, %c0_6], %5 {strides = array<i32>} : memref<1x24x128xf32, #tpu.memory_space<vmem>>, vector<1x24x128xf32>,
    %6 = tpu.iota {dimensions = array<i32: 0>} : vector<24x128xi32>
    %7 = tpu.iota {dimensions = array<i32: 1>} : vector<24x128xi32>
    %c0_7 = arith.constant 0 : index
    %8 = memref.load %arg1[%c0_7] : memref<1xi32, #tpu.memory_space<smem>>
    %c1_i32 = arith.constant 1 : i32
    %9 = arith.addi %arg0, %c1_i32 : i32
    %c-2048144789_i32 = arith.constant -2048144789 : i32
    %10 = arith.muli %9, %c-2048144789_i32 : i32
    %11 = arith.addi %8, %10 : i32
    %c128_i32 = arith.constant 128 : i32
    %12 = vector.broadcast %c128_i32 : i32 to vector<24x128xi32>
    %13 = arith.muli %6, %12 : vector<24x128xi32>
    %14 = arith.addi %13, %7 : vector<24x128xi32>
    %15 = vector.broadcast %11 : i32 to vector<24x128xi32>
    %16 = arith.addi %14, %15 : vector<24x128xi32>
    %cst = arith.constant 1.52587887E-9 : f32
    %cst_8 = arith.constant 0.999899983 : f32
    %c32768_i32 = arith.constant 32768 : i32
    %cst_9 = arith.constant 5.000000e-02 : f32
    %c0_i32 = arith.constant 0 : i32
    %c0_i32_10 = arith.constant 0 : i32
    %17:2 = scf.while (%arg5 = %c0_i32, %arg6 = %c0_i32_10) : (i32, i32) -> (i32, i32) {
      %c12_i32 = arith.constant 12 : i32
      %18 = arith.cmpi slt, %arg5, %c12_i32 : i32
      %c4_i32 = arith.constant 4 : i32
      %19 = arith.cmpi sle, %arg6, %c4_i32 : i32
      %20 = arith.andi %18, %19 : i1
      scf.condition(%20) %arg5, %arg6 : i32, i32
    } do {
    ^bb0(%arg5: i32, %arg6: i32):
      %c0_11 = arith.constant 0 : index
      %c0_12 = arith.constant 0 : index
      %c0_13 = arith.constant 0 : index
      %18 = vector.load %arg4[%c0_11, %c0_12, %c0_13] : memref<1x24x128xf32, #tpu.memory_space<vmem>>, vector<1x24x128xf32>
      %19 = vector.shape_cast %18 : vector<1x24x128xf32> to vector<24x128xf32>
      %c-1640531527_i32 = arith.constant -1640531527 : i32
      %20 = arith.muli %arg5, %c-1640531527_i32 : i32
      %21 = vector.broadcast %20 : i32 to vector<24x128xi32>
      %22 = arith.addi %16, %21 : vector<24x128xi32>
      %c16_i32 = arith.constant 16 : i32
      %23 = vector.broadcast %c16_i32 : i32 to vector<24x128xi32>
      %24 = arith.shrui %22, %23 : vector<24x128xi32>
      %25 = arith.xori %22, %24 : vector<24x128xi32>
      %c2146121005_i32 = arith.constant 2146121005 : i32
      %26 = vector.broadcast %c2146121005_i32 : i32 to vector<24x128xi32>
      %27 = arith.muli %25, %26 : vector<24x128xi32>
      %c15_i32 = arith.constant 15 : i32
      %28 = vector.broadcast %c15_i32 : i32 to vector<24x128xi32>
      %29 = arith.shrui %27, %28 : vector<24x128xi32>
      %30 = arith.xori %27, %29 : vector<24x128xi32>
      %c-2073254261_i32 = arith.constant -2073254261 : i32
      %31 = vector.broadcast %c-2073254261_i32 : i32 to vector<24x128xi32>
      %32 = arith.muli %30, %31 : vector<24x128xi32>
      %c16_i32_14 = arith.constant 16 : i32
      %33 = vector.broadcast %c16_i32_14 : i32 to vector<24x128xi32>
      %34 = arith.shrui %32, %33 : vector<24x128xi32>
      %35 = arith.xori %32, %34 : vector<24x128xi32>
      %c16_i32_15 = arith.constant 16 : i32
      %36 = vector.broadcast %c16_i32_15 : i32 to vector<24x128xi32>
      %37 = arith.shrui %35, %36 : vector<24x128xi32>
      %c65535_i32 = arith.constant 65535 : i32
      %38 = vector.broadcast %c65535_i32 : i32 to vector<24x128xi32>
      %39 = arith.andi %35, %38 : vector<24x128xi32>
      %40 = arith.sitofp %37 : vector<24x128xi32> to vector<24x128xf32>
      %41 = vector.broadcast %cst : f32 to vector<24x128xf32>
      %42 = arith.mulf %40, %41 : vector<24x128xf32>
      %43 = vector.broadcast %cst_8 : f32 to vector<24x128xf32>
      %44 = arith.addf %43, %42 : vector<24x128xf32>
      %45 = arith.mulf %19, %44 : vector<24x128xf32>
      %c127_i32 = arith.constant 127 : i32
      %46 = tpu.dynamic_rotate %45 by %c127_i32 dim 1 : vector<24x128xf32>, i32 -> vector<24x128xf32>
      %c1_i32_16 = arith.constant 1 : i32
      %47 = tpu.dynamic_rotate %45 by %c1_i32_16 dim 1 : vector<24x128xf32>, i32 -> vector<24x128xf32>
      %48 = arith.maximumf %46, %47 : vector<24x128xf32>
      %49 = arith.maximumf %45, %48 : vector<24x128xf32>
      %c23_i32 = arith.constant 23 : i32
      %50 = tpu.dynamic_rotate %49 by %c23_i32 dim 0 : vector<24x128xf32>, i32 -> vector<24x128xf32>
      %c1_i32_17 = arith.constant 1 : i32
      %51 = tpu.dynamic_rotate %49 by %c1_i32_17 dim 0 : vector<24x128xf32>, i32 -> vector<24x128xf32>
      %52 = arith.maximumf %50, %51 : vector<24x128xf32>
      %53 = arith.maximumf %49, %52 : vector<24x128xf32>
      %54 = vector.broadcast %c32768_i32 : i32 to vector<24x128xi32>
      %55 = arith.cmpi sge, %39, %54 : vector<24x128xi32>
      %cst_18 = arith.constant 0.000000e+00 : f32
      %56 = vector.broadcast %cst_18 : f32 to vector<24x128xf32>
      %57 = arith.select %55, %53, %56 : vector<24x128xi1>, vector<24x128xf32>
      %58 = arith.mulf %57, %0 : vector<24x128xf32>
      %59 = arith.subf %58, %19 : vector<24x128xf32>
      %60 = vector.broadcast %cst_9 : f32 to vector<24x128xf32>
      %61 = arith.cmpf ogt, %59, %60 : vector<24x128xf32>
      %62 = arith.select %61, %58, %19 : vector<24x128xi1>, vector<24x128xf32>
      %c0_19 = arith.constant 0 : index
      %c0_20 = arith.constant 0 : index
      %c0_21 = arith.constant 0 : index
      %63 = vector.load %arg4[%c0_19, %c0_20, %c0_21] : memref<1x24x128xf32, #tpu.memory_space<vmem>>, vector<1x24x128xf32>
      %64 = vector.shape_cast %63 : vector<1x24x128xf32> to vector<24x128xf32>
      %65 = vector.shape_cast %62 : vector<24x128xf32> to vector<1x24x128xf32>
      tpu.vector_store %arg4[%c0_19, %c0_20, %c0_21], %65 {strides = array<i32>} : memref<1x24x128xf32, #tpu.memory_space<vmem>>, vector<1x24x128xf32>,
      %66 = vector.shape_cast %59 : vector<24x128xf32> to vector<1x24x128xf32>
      %cst_22 = arith.constant dense<0.000000e+00> : vector<1xf32>
      %67 = vector.multi_reduction <add>, %66, %cst_22 [1, 2] : vector<1x24x128xf32> to vector<1xf32>
      %68 = vector.shape_cast %67 : vector<1xf32> to vector<1x1x1xf32>
      %69 = vector.extract %68[0, 0, 0] : f32 from vector<1x1x1xf32>
      %cst_23 = arith.constant 0.000000e+00 : f32
      %70 = arith.cmpf oeq, %69, %cst_23 : f32
      %c1_i32_24 = arith.constant 1 : i32
      %71 = arith.addi %arg6, %c1_i32_24 : i32
      %c0_i32_25 = arith.constant 0 : i32
      %72 = arith.select %70, %71, %c0_i32_25 : i32
      %c1_i32_26 = arith.constant 1 : i32
      %73 = arith.addi %arg5, %c1_i32_26 : i32
      scf.yield %73, %72 : i32, i32
    }
    return
  }
  func.func @transform_0(%arg0: i32) -> i32 {
    %c0_i32 = arith.constant 0 : i32
    %c0_i32_0 = arith.constant 0 : i32
    return %c0_i32 : i32
  }
  func.func @transform_1(%arg0: i32) -> (i32, i32, i32) {
    %c0_i32 = arith.constant 0 : i32
    %c0_i32_0 = arith.constant 0 : i32
    %c0_i32_1 = arith.constant 0 : i32
    return %arg0, %c0_i32, %c0_i32_0 : i32, i32, i32
  }
  func.func @transform_2(%arg0: i32) -> (i32, i32) {
    %c0_i32 = arith.constant 0 : i32
    %c0_i32_0 = arith.constant 0 : i32
    %c0_i32_1 = arith.constant 0 : i32
    return %c0_i32, %c0_i32_0 : i32, i32
  }
  func.func @transform_3(%arg0: i32) -> (i32, i32, i32) {
    %c0_i32 = arith.constant 0 : i32
    %c0_i32_0 = arith.constant 0 : i32
    %c0_i32_1 = arith.constant 0 : i32
    return %arg0, %c0_i32, %c0_i32_0 : i32, i32, i32
  }
}

</mosaic_0001>

<bundles_post_ra>
// kernel: tpu_custom_call.1
= control target key start
LH: loop header
LB: loop body
LE: loop exit
PB: predicated region body
PF: predicated region fallthrough
CT: control target
= control target key end

     0   :  { %s919_s0 = inlined_call_operand.<no memory space> [shape: s32[1], index: 0, kind: input, shape index: {}]   ;;  %s920_s1 = inlined_call_operand.hbm [shape: f32[2,24,128], index: 1, kind: input, shape index: {}, may-alias: {1,3}]   ;;  %s921_s2 = inlined_call_operand.vmem [shape: f32[24,128], index: 2, kind: input, shape index: {}]   ;;  %s922_s3 = inlined_call_operand.hbm [shape: f32[2,24,128], index: 3, kind: output, shape index: {}, may-alias: {1,3}]  }
   0x1   :  { %8 = sst [smem:[#allocation2]] %s919_s0 }
   0x2   :  { %9 = vsyncpa [#allocation4], 0 }
   0x3   :  { %11 = vsyncpa [#allocation4 + $0x1], 0 }
   0x4   :  { %12 = vsyncpa [#allocation5], 0 }
   0x5   :  { %14 = vsyncpa [#allocation5 + $0x1], 0  ;;  %s672_s14 = smov 0   ;;  %s674_s15 = smov 0  }
   0x6   :  { %s676_s16 = smov 0   ;;  %s678_s17 = smov 0  }
   0x7 LB: > { %s693_s0 = sadd.s32 4294967295, %s631_s17   ;;  %s449_s18 = sadd.s32 4294967294, %s631_s17   ;;  %s631_s17 = sphi %s678_s17, %s938_s17   ;;  %s627_s16 = sphi %s676_s16, %s937_s16   ;;  %s623_s15 = sphi %s674_s15, %s936_s15   ;;  %s619_s14 = sphi %s672_s14, %s935_s14  }
   0x8   : > { %s697_s19 = sadd.s32 1, %s631_s17   ;;  %s48_s20 = sadd.s32 1, %s627_s16 }
   0x9   : > { %s45_s21 = ssub.s32 %s631_s17, %s697_s19  ;;  %p55_p0 = scmp.ne.s32.totalorder %s627_s16, %s623_s15 }
   0xa   : > { %p46_p1 = scmp.eq.s32.totalorder %s45_s21, 0  ;;  %p56_p2 = scmp.eq.s32.totalorder %s631_s17, 0 }
   0xb   : > { %p61_p3 = scmp.ne.s32.totalorder %s623_s15, %s619_s14  ;;  %p62_p4 = scmp.eq.s32.totalorder %s693_s0, 0 }
   0xc   : > { %s709_s22 = scalar_select %p46_p1, %s627_s16, %s48_s20  }
   0xd   : > { %p57_p5 = por %p56_p2, %p55_p0  ;;  %p711_p6 = por %p62_p4, %p61_p3 }
   0xe   : > { %p106_p7 = scmp.eq.s32.totalorder %s693_s0, 1  ;;  %p112_p8 = scmp.eq.s32.totalorder %s449_s18, 1 }
   0xf   : > { %s925_s23 = scalar_select %p711_p6, 1, 0 }
  0x10   : > { %p475_p10 = scmp.lt.s32.totalorder %s631_s17, 2  ;;  %p718_p11 = por %p106_p7, %p55_p0 }
  0x11   : > { %p722_p12 = por %p112_p8, %p61_p3  ;;  %s138_s26 = sand.u32 1, %s627_s16  }
  0x12   : > { %s926_s24 = scalar_select %p718_p11, 1, 0 }
  0x13   : > { %s927_s25 = scalar_select %p722_p12, 1, 0 }
  0x14   : > { %s458_s27 = smul.u32 384, %s631_s17  ;;  %p733_p13 = pnand %p475_p10, %p57_p5 }
  0x15   : > { %s457_s28 = smul.u32 24, %s138_s26  ;;  %s739_s8 = scalar_lea.sflag [#allocation4], %s138_s26 }
  0x16   : > { %s731_s4 = scalar_lea.hbm %s920_s1, %s458_s27  ;;  %p533_p1 = pneg %p733_p13 }
  0x17   : > { %s142_s6 = scalar_lea.vmem [#allocation3], %s457_s28  ;;  %s531_s9 = scalar_lea.hbm %s731_s4, 384 }
  0x18   : > { %s149_s7 = sshll.u32 %s142_s6, 4  ;;  %p532_p0 = scmp.ne.s32.totalorder %s731_s4, %s531_s9  ;;  %s737_s7 = int_to_ptr.vmem [resolvable:$true] %s149_s7 }
  0x19   : > { %s536_s12 = scalar_lea.hbm %s920_s1, 768  ;;  %p537_p4 = scmp.lt.s32.totalorder %s731_s4, %s920_s1 }
  0x1a   : > { %p534_p2 = pnand %p533_p1, %p532_p0  ;;  %p538_p5 = scmp.lt.s32.totalorder %s536_s12, %s531_s9 }
  0x1c   : > { %p535_p3 = pneg %p534_p2  ;;  %p539_p7 = por %p538_p5, %p537_p4 }
  0x1e   : > { %p540_p8 = pnand %p539_p7, %p535_p3 }
  0x20   : > { %543 = shalt.err (!%p540_p8)
}
  0x21   : > { %s544_s20 = scalar_lea.vmem %s737_s7, 384  ;;  %s641_s21 = smov [#allocation3]  }
  0x22   : > { %p545_p10 = scmp.ne.s32.totalorder %s737_s7, %s544_s20  ;;  %s549_s26 = sshll.u32 %s641_s21, 4  ;;  %s550_s26 = int_to_ptr.vmem [resolvable:$false] %s549_s26 }
  0x23   : > { %s551_s27 = scalar_lea.vmem %s550_s26, 768  ;;  %p552_p2 = scmp.lt.s32.totalorder %s737_s7, %s550_s26 }
  0x24   : > { %p547_p9 = pnand %p545_p10, %p533_p1  ;;  %p553_p12 = scmp.lt.s32.totalorder %s551_s27, %s544_s20 }
  0x26   : > { %p548_p0 = pneg %p547_p9  ;;  %p554_p11 = por %p553_p12, %p552_p2 }
  0x28   : > { %p555_p6 = pnand %p554_p11, %p548_p0 }
  0x2a   : > { %558 = shalt.err (!%p555_p6)
}
  0x2b   : > { %s642_s28 = smov 128   ;;  %s643_s29 = smov 8  }
  0x2c   : > { %470 = dma.hbm_to_vmem [thread:$0]  (!%p733_p13), %s731_s4, 384, %s737_s7, %s739_s8, %s642_s28, %s642_s28, %s643_s29  }
  0x2d   : > { %p453_p9 = scmp.ge.s32.totalorder %s631_s17, 1  ;;  %p157_p1 = scmp.lt.s32.totalorder %s631_s17, 3 }
  0x2f   : > { %p158_p3 = pnand %p453_p9, %p157_p1 }
  0x30   : > { %s763_s30 = sand.u32 (!%p158_p3), 1, %s623_s15   ;;  %p929_p6 = scmp.ne.s32.totalorder (!%p158_p3), %s925_s23, 0 }
  0x31   : > { %161 = sbr.rel (%p158_p3) target bundleno = 472 (0x1d8), region = 32  ;;  %s164_s9 = scalar_lea.sflag (!%p158_p3), [#allocation4], %s763_s30 }
  0x32   : > { %s459_s6 = smul.u32 (!%p158_p3), 24, %s763_s30 }
  0x34   : > { %s167_s10 = scalar_lea.vmem (!%p158_p3), [#allocation3], %s459_s6 }
  0x36   : > { %610 = dma.done.wait (%p929_p6), %s164_s9, 384  }
  0x37   : > { %612 = vsyncadd (%p929_p6), %s164_s9, 4294966912  ;;  %v199_v0 = vlaneseq  ;;  %s206_s4 = sadd.s32 1, %s693_s0  ;;  %s205_s5 = sld [smem:[#allocation2]]  ;;  %v780_v9 = vld [vmem:[%s921_s2] sm:$0xff]  ;;  %v785_v10 = vld [vmem:[%s921_s2 + $0x8] sm:$0xff] }
  0x38   : > { %s207_s7 = smul.u32 2246822507, %s206_s4  ;;  %v790_v11 = vld [vmem:[%s921_s2 + $0x10] sm:$0xff]  ;;  %v193_v15 = vld [vmem:[%s167_s10] sm:$0xff]  ;;  %v194_v16 = vld [vmem:[%s167_s10 + $0x8] sm:$0xff]  ;;  %s794_s21 = scalar_lea.vmem [#allocation6], %s459_s6 }
  0x39   : > { %v772_v1 = vshrl.u32 %v199_v0, 7  ;;  %v204_v2 = vand.u32 127, %v199_v0  ;;  %v195_v17 = vld [vmem:[%s167_s10 + $0x10] sm:$0xff]  ;;  %196 = vst [vmem:[%s794_s21] sm:$0xff] %v193_v15  ;;  %197 = vst [vmem:[%s794_s21 + $0x8] sm:$0xff] %v194_v16  ;;  %s803_s26 = smov 0   ;;  %s805_s27 = smov 0  }
  0x3a   : > { %198 = vst [vmem:[%s794_s21 + $0x10] sm:$0xff] %v195_v17 }
  0x3b   : > { %v201_v3 = vadd.s32 8, %v772_v1  ;;  %v202_v4 = vadd.s32 16, %v772_v1  ;;  %v209_v5 = vmul.u32 128, %v772_v1 }
  0x3d   : > { %v210_v6 = vmul.u32 128, %v201_v3  ;;  %v211_v7 = vmul.u32 128, %v202_v4  ;;  %v212_v8 = vadd.s32 %v209_v5, %v204_v2  ;;  %s208_s20 = sadd.s32 %s207_s7, %s205_s5 }
  0x3e   : > { %v215_v14 = vstv %s208_s20 }
  0x3f   : > { %v213_v12 = vadd.s32 %v210_v6, %v204_v2  ;;  %v214_v13 = vadd.s32 %v211_v7, %v204_v2  ;;  %v792_v18 = vadd.s32 %v215_v14, %v212_v8 }
  0x41   : > { %v799_v19 = vadd.s32 %v215_v14, %v213_v12  ;;  %v801_v20 = vadd.s32 %v215_v14, %v214_v13 }
  0x42 LB: >> { %s231_s28 = smul.u32 2654435769, %s639_s27  ;;  %s351_s29 = sadd.s32 1, %s639_s27   ;;  %v822_v57 = vld [vmem:[%s794_s21 + $0x10] sm:$0xff]  ;;  %v825_v58 = vld [vmem:[%s794_s21] sm:$0xff]  ;;  %v828_v62 = vld [vmem:[%s794_s21 + $0x8] sm:$0xff]  ;;  %s639_s27 = sphi %s805_s27, %s931_s27   ;;  %s635_s26 = sphi %s803_s26, %s930_s26  }
  0x43   : >> { %s644_s6 = smov 127   ;;  %s645_s9 = smov 1   ;;  %vm306_vm0 = vcmp.lt.s32.totalorder %v772_v1, 1  ;;  %vm299_vm1 = vcmp.lt.s32.totalorder %v772_v1, 7 }
  0x44   : >> { %v232_v21 = vstv %s231_s28  ;;  %s349_s4 = sadd.s32 1, %s635_s26  ;;  %p222_p12 = scmp.lt.s32.totalorder %s351_s29, 12 }
  0x45   : >> { %v235_v22 = vadd.s32 %v232_v21, %v801_v20  ;;  %v233_v23 = vadd.s32 %v232_v21, %v792_v18  ;;  %v234_v24 = vadd.s32 %v232_v21, %v799_v19  ;;  %s931_s27 = smov %s351_s29 }
  0x47   : >> { %v238_v25 = vshrl.u32 %v235_v22, 16  ;;  %v236_v26 = vshrl.u32 %v233_v23, 16  ;;  %v237_v27 = vshrl.u32 %v234_v24, 16 }
  0x49   : >> { %v241_v28 = vxor.u32 %v238_v25, %v235_v22  ;;  %v239_v29 = vxor.u32 %v236_v26, %v233_v23  ;;  %v240_v30 = vxor.u32 %v237_v27, %v234_v24 }
  0x4b   : >> { %v244_v31 = vmul.u32 2146121005, %v241_v28  ;;  %v242_v32 = vmul.u32 2146121005, %v239_v29 }
  0x4c   : >> { %v243_v33 = vmul.u32 2146121005, %v240_v30 }
  0x4d   : >> { %v247_v34 = vshrl.u32 %v244_v31, 15  ;;  %v245_v35 = vshrl.u32 %v242_v32, 15 }
  0x4e   : >> { %v246_v36 = vshrl.u32 %v243_v33, 15 }
  0x4f   : >> { %v250_v37 = vxor.u32 %v247_v34, %v244_v31  ;;  %v248_v38 = vxor.u32 %v245_v35, %v242_v32 }
  0x50   : >> { %v249_v39 = vxor.u32 %v246_v36, %v243_v33 }
  0x51   : >> { %v253_v40 = vmul.u32 2221713035, %v250_v37  ;;  %v251_v41 = vmul.u32 2221713035, %v248_v38 }
  0x52   : >> { %v252_v42 = vmul.u32 2221713035, %v249_v39 }
  0x53   : >> { %v256_v43 = vshrl.u32 %v253_v40, 16  ;;  %v254_v44 = vshrl.u32 %v251_v41, 16 }
  0x54   : >> { %v255_v45 = vshrl.u32 %v252_v42, 16 }
  0x55   : >> { %v818_v46 = vxor.u32 %v256_v43, %v253_v40  ;;  %v257_v47 = vxor.u32 %v254_v44, %v251_v41 }
  0x56   : >> { %v258_v48 = vxor.u32 %v255_v45, %v252_v42 }
  0x57   : >> { %v262_v49 = vshrl.u32 %v818_v46, 16  ;;  %v260_v50 = vshrl.u32 %v257_v47, 16  ;;  %v263_v24 = vand.u32 65535, %v257_v47  ;;  %v265_v30 = vand.u32 65535, %v818_v46 }
  0x58   : >> { %v261_v51 = vshrl.u32 %v258_v48, 16  ;;  %v264_v25 = vand.u32 65535, %v258_v48 }
  0x59   : >> { %v268_v52 = vcvt.s32.f32 %v262_v49  ;;  %v266_v53 = vcvt.s32.f32 %v260_v50  ;;  %vm316_vm2 = vcmp.ge.s32.totalorder %v263_v24, 32768  ;;  %vm318_vm4 = vcmp.ge.s32.totalorder %v265_v30, 32768 }
  0x5a   : >> { %v267_v54 = vcvt.s32.f32 %v261_v51  ;;  %vm317_vm3 = vcmp.ge.s32.totalorder %v264_v25, 32768 }
  0x5b   : >> { %v271_v55 = vmul.f32 1.5258789e-09, %v268_v52  ;;  %v269_v56 = vmul.f32 1.5258789e-09, %v266_v53 }
  0x5c   : >> { %v270_v59 = vmul.f32 1.5258789e-09, %v267_v54 }
  0x5d   : >> { %v274_v60 = vadd.f32 0.9999, %v271_v55  ;;  %v272_v61 = vadd.f32 0.9999, %v269_v56 }
  0x5e   : >> { %v273_v63 = vadd.f32 0.9999, %v270_v59 }
  0x5f   : >> { %v277_v0 = vmul.f32 %v274_v60, %v822_v57  ;;  %v275_v2 = vmul.f32 %v272_v61, %v825_v58 }
  0x60   : >> { %v276_v3 = vmul.f32 %v273_v63, %v828_v62 }
  0x61   : >> { %282 = vrot.lane.b32.xlu1 %v277_v0, %s644_s6  ;;  %278 = vrot.lane.b32.xlu0 %v275_v2, %s644_s6 }
  0x65   : >> { %284 = vrot.lane.b32.xlu1 %v275_v2, %s645_s9  ;;  %280 = vrot.lane.b32.xlu0 %v276_v3, %s644_s6 }
  0x69   : >> { %288 = vrot.lane.b32.xlu1 %v277_v0, %s645_s9  ;;  %286 = vrot.lane.b32.xlu0 %v276_v3, %s645_s9 }
  0xd3   : >> { %v283_v4 = vpop.permute.xlu1 %282  ;;  %v279_v5 = vpop.permute.xlu0 %278 }
  0xd7   : >> { %v285_v6 = vpop.permute.xlu1 %284  ;;  %v281_v7 = vpop.permute.xlu0 %280 }
  0xd8   : >> { %v290_v8 = vmax.f32 %v279_v5, %v285_v6 }
  0xda   : >> { %v293_v12 = vmax.f32 %v275_v2, %v290_v8 }
  0xdb   : >> { %v289_v13 = vpop.permute.xlu1 %288  ;;  %v287_v14 = vpop.permute.xlu0 %286 }
  0xdc   : >> { %v292_v15 = vmax.f32 %v283_v4, %v289_v13  ;;  %v291_v16 = vmax.f32 %v281_v7, %v287_v14  ;;  %v296_v22 = vrot.slane %v293_v12, 1  ;;  %v303_v23 = vrot.slane %v293_v12, 7 }
  0xde   : >> { %v295_v17 = vmax.f32 %v277_v0, %v292_v15  ;;  %v294_v21 = vmax.f32 %v276_v3, %v291_v16 }
  0xe0   : >> { %v298_v26 = vrot.slane %v295_v17, 1  ;;  %v305_v27 = vrot.slane %v295_v17, 7  ;;  %v297_v28 = vrot.slane %v294_v21, 1  ;;  %v304_v29 = vrot.slane %v294_v21, 7 }
  0xe2   : >> { %v309_v31 = vsel %vm306_vm0, %v305_v27, %v303_v23  ;;  %v300_v32 = vsel %vm299_vm1, %v297_v28, %v298_v26  ;;  %v301_v33 = vsel %vm299_vm1, %v296_v22, %v297_v28  ;;  %v308_v34 = vsel %vm306_vm0, %v303_v23, %v304_v29 }
  0xe3   : >> { %v311_v35 = vmax.f32 %v300_v32, %v308_v34  ;;  %v302_v36 = vsel %vm299_vm1, %v298_v26, %v296_v22  ;;  %v307_v37 = vsel %vm306_vm0, %v304_v29, %v305_v27  ;;  %v310_v38 = vmax.f32 %v301_v33, %v309_v31 }
  0xe4   : >> { %v312_v39 = vmax.f32 %v302_v36, %v307_v37 }
  0xe5   : >> { %v314_v40 = vmax.f32 %v294_v21, %v311_v35  ;;  %v313_v41 = vmax.f32 %v293_v12, %v310_v38 }
  0xe6   : >> { %v315_v42 = vmax.f32 %v295_v17, %v312_v39 }
  0xe7   : >> { %v319_v43 = vsel %vm316_vm2, %v313_v41, 0.0  ;;  %v320_v44 = vsel %vm317_vm3, %v314_v40, 0.0 }
  0xe8   : >> { %v321_v45 = vsel %vm318_vm4, %v315_v42, 0.0  ;;  %v322_v46 = vmul.f32 %v319_v43, %v780_v9  ;;  %v323_v47 = vmul.f32 %v320_v44, %v785_v10 }
  0xe9   : >> { %v324_v48 = vmul.f32 %v321_v45, %v790_v11 }
  0xea   : >> { %v325_v49 = vsub.f32 %v322_v46, %v825_v58  ;;  %v326_v50 = vsub.f32 %v323_v47, %v828_v62 }
  0xeb   : >> { %v327_v51 = vsub.f32 %v324_v48, %v822_v57 }
  0xec   : >> { %vm328_vm5 = vcmp.gt.f32.partialorder %v325_v49, 0.05  ;;  %v337_v52 = vadd.f32 %v326_v50, %v325_v49  ;;  %vm329_vm6 = vcmp.gt.f32.partialorder %v326_v50, 0.05 }
  0xed   : >> { %vm330_vm7 = vcmp.gt.f32.partialorder %v327_v51, 0.05  ;;  %v331_v53 = vsel %vm328_vm5, %v322_v46, %v825_v58  ;;  %v332_v54 = vsel %vm329_vm6, %v323_v47, %v828_v62 }
  0xee   : >> { %v333_v55 = vsel %vm330_vm7, %v324_v48, %v822_v57  ;;  %334 = vst [vmem:[%s794_s21] sm:$0xff] %v331_v53  ;;  %v338_v56 = vadd.f32 %v337_v52, %v327_v51  ;;  %335 = vst [vmem:[%s794_s21 + $0x8] sm:$0xff] %v332_v54 }
  0xef   : >> { %336 = vst [vmem:[%s794_s21 + $0x10] sm:$0xff] %v333_v55 }
  0xf0   : >> { %339 = vadd.xlane.f32.xlu0 %v338_v56 }
 0x179   : >> { %v340_v59 = vpop.xlane.xlu0 %339 }
 0x17a   : >> { %v341_v60 = vrot.slane %v340_v59, 4 }
 0x17c   : >> { %v342_v61 = vadd.f32 %v341_v60, %v340_v59 }
 0x17e   : >> { %v343_v63 = vrot.slane %v342_v61, 2 }
 0x180   : >> { %v344_v0 = vadd.f32 %v343_v63, %v342_v61 }
 0x182   : >> { %v345_v2 = vrot.slane %v344_v0, 1 }
 0x184   : >> { %v346_v3 = vadd.f32 %v345_v2, %v344_v0 }
 0x186   : >> { %460 = vpush %v346_v3 }
 0x1b7   : >> { %s461_s10 = spop %460 }
 0x1b8   : >> { %p348_p11 = scmp.eq.f32.partialorder %s461_s10, 0.0 }
 0x1ba   : >> { %s940_s4 = smov (!%p348_p11, %s349_s4), 0 }
 0x1bb   : >> { %p223_p13 = scmp.le.s32.totalorder %s940_s4, 4  ;;  %s930_s26 = smov %s940_s4 }
 0x1bd   : >> { %p224_p4 = pnand %p223_p13, %p222_p12 }
 0x1be   : > { %s462_s5 = smul.u32 (%p224_p4), 384, %s693_s0  ;;  %s366_s7 = sshll.u32 (%p224_p4), %s794_s21, 4  ;;  %s876_s7 = int_to_ptr.vmem [resolvable:$true] %s366_s7 }
 0x1bf   : > { %227 = sbr.rel (!%p224_p4) target bundleno = 66 (0x42), region = 84  ;;  %s353_s12 = scalar_lea.sflag (%p224_p4), [#allocation5], %s763_s30 }
 0x1c0   : > { %s874_s11 = scalar_lea.hbm (%p224_p4), %s922_s3, %s462_s5  ;;  %s559_s13 = scalar_lea.vmem (%p224_p4), %s876_s7, 384 }
 0x1c1   : > { %p560_p5 = scmp.ne.s32.totalorder (%p224_p4), %s876_s7, %s559_s13  ;;  %p932_p7 = scmp.ne.s32.totalorder (%p224_p4), %s926_s24, 0 }
 0x1c2   : > { %s646_s18 = smov (%p224_p4), [#allocation6]  }
 0x1c3   : > { %p561_p8 = pnand (%p224_p4), %p560_p5, %p932_p7  ;;  %s563_s20 = sshll.u32 (%p224_p4), %s646_s18, 4  ;;  %s564_s20 = int_to_ptr.vmem [resolvable:$false] %s563_s20 }
 0x1c4   : > { %s565_s0 = scalar_lea.vmem %s564_s20, 768  ;;  %p566_p0 = scmp.lt.s32.totalorder %s876_s7, %s564_s20 }
 0x1c5   : > { %p562_p10 = pneg %p561_p8  ;;  %p567_p2 = scmp.lt.s32.totalorder %s565_s0, %s559_s13 }
 0x1c7   : > { %p568_p9 = por %p567_p2, %p566_p0 }
 0x1c9   : > { %p569_p1 = pnand %p568_p9, %p562_p10 }
 0x1cb   : > { %572 = shalt.err (!%p569_p1)
}
 0x1cc   : > { %s573_s21 = scalar_lea.hbm %s874_s11, 384  ;;  %s577_s28 = scalar_lea.hbm %s922_s3, 768 }
 0x1cd   : > { %p574_p3 = scmp.ne.s32.totalorder %s874_s11, %s573_s21  ;;  %p578_p12 = scmp.lt.s32.totalorder %s874_s11, %s922_s3 }
 0x1ce   : > { %p579_p13 = scmp.lt.s32.totalorder %s577_s28, %s573_s21 }
 0x1cf   : > { %p575_p6 = pnand %p574_p3, %p932_p7 }
 0x1d0   : > { %p580_p4 = por %p579_p13, %p578_p12 }
 0x1d1   : > { %p576_p11 = pneg %p575_p6 }
 0x1d3   : > { %p581_p5 = pnand %p580_p4, %p576_p11 }
 0x1d5   : > { %584 = shalt.err (!%p581_p5)
}
 0x1d6   : > { %s647_s9 = smov 128   ;;  %s648_s10 = smov 8  }
 0x1d7   : > { %465 = dma.vmem_to_hbm [thread:$0]  (%p932_p7), %s876_s7, 384, %s874_s11, %s353_s12, %s647_s9, %s647_s9, %s648_s10  }
 0x1d8 PF: > { %s381_s4 = sand.u32 1, %s619_s14   ;;  %p933_p8 = scmp.ne.s32.totalorder %s927_s25, 0 }
 0x1d9   : > { %p934_p10 = scmp.ge.s32.totalorder %s631_s17, 2  ;;  %s382_s5 = scalar_lea.sflag [#allocation5], %s381_s4 }
 0x1db   : > { %p472_p0 = pnand %p934_p10, %p933_p8 }
 0x1dd   : > { %p473_p2 = pneg %p472_p0 }
 0x1df   : > { %614 = dma.done.wait (%p473_p2), %s382_s5, 384  }
 0x1e0   : > { %616 = vsyncadd (%p473_p2), %s382_s5, 4294966912  ;;  %p17_p9 = scmp.ge.s32.totalorder %s697_s19, 4   ;;  %s935_s14 = smov %s623_s15 }
 0x1e1   : > { %s936_s15 = smov %s627_s16  ;;  %s937_s16 = smov %s709_s22 }
 0x1e2   : > { %s938_s17 = smov %s697_s19  ;;  %19 = sbr.rel (!%p17_p9) target bundleno = 7 (0x7), region = 95 }
 0x1e7   :  { %387 = vsyncpa [#allocation4], 1 }
 0x1e8   :  { %389 = vsyncpa [#allocation4 + $0x1], 1 }
 0x1e9   :  { %390 = vsyncpa [#allocation5], 1 }
 0x1ea   :  { %392 = vsyncpa [#allocation5 + $0x1], 1 }

</bundles_post_ra>
